<compile_context>
chip_gen: v5e
topology: v5e:2x2
jax: 0.10.0
libtpu: 0.0.40
codegen_flags: <defaults>
</compile_context>

<pallas_src>
import jax
import jax.numpy as jnp
from jax.experimental import pallas as pl
from jax.experimental.pallas import tpu as pltpu


def _round_up(v, m):
    return ((v + m - 1) // m) * m


def _patch_projection_kernel(x_ref, w_ref, b_ref, o_ref):
    """Per-tile patch projection.

    x_ref: (TM, K)       bf16 flattened patches
    w_ref: (K, hidden)   bf16 projection weight (in_features x out_features)
    b_ref: (1, hidden)   f32 bias
    o_ref: (TM, hidden)  output (out_dtype, default bf16)
    """
    # bf16 x bf16 MXU matmul with f32 accumulation, f32 bias add.
    y = jnp.dot(x_ref[...], w_ref[...], preferred_element_type=jnp.float32)
    y = y + b_ref[...]
    o_ref[...] = y.astype(o_ref.dtype)


def prepare_projection_params(conv_weight, conv_bias):
    """One-time (parameter-load-time) prep of the Conv2d weights.

    conv_weight: (hidden, C, ph, pw)  -- torch Conv2d layout
    conv_bias:   (hidden,)
    returns: w_flat (K=C*ph*pw, hidden) in bf16, bias (1, hidden) in f32
    """
    hidden = conv_weight.shape[0]
    w_flat = conv_weight.reshape(hidden, -1).T          # (K, hidden)
    return (w_flat.astype(jnp.bfloat16),
            conv_bias.reshape(1, hidden).astype(jnp.float32))


def patch_embeddings_forward(pixel_values, patch_size, w_flat, bias,
                             *, tile_rows=4096, out_dtype=jnp.bfloat16):
    """Pallas implementation of DonutSwinPatchEmbeddings.forward.

    pixel_values: (B, C, H, W)
    patch_size:   (ph, pw)
    w_flat:       (C*ph*pw, hidden)  from prepare_projection_params (bf16)
    bias:         (1, hidden)        from prepare_projection_params (f32)
    returns:      (embeddings (B, gh*gw, hidden) in out_dtype, (gh, gw))
    """
    ph, pw = patch_size
    batch, num_channels, height, width = pixel_values.shape

    # maybe_pad: pad right/bottom so H, W are multiples of the patch size.
    pad_h = (-height) % ph
    pad_w = (-width) % pw
    if pad_h or pad_w:
        pixel_values = jnp.pad(
            pixel_values, ((0, 0), (0, 0), (0, pad_h), (0, pad_w)))
    hp, wp = height + pad_h, width + pad_w
    gh, gw = hp // ph, wp // pw

    k_dim, hidden = w_flat.shape
    assert k_dim == num_channels * ph * pw

    # Patchify (glue): (B,C,Hp,Wp) -> (B*gh*gw, C*ph*pw); per-patch flatten
    # order (C, ph, pw) matches the Conv2d weight flatten order.  The bf16
    # cast fuses into this XLA transpose pass and halves the kernel's x DMA.
    x = pixel_values.reshape(batch, num_channels, gh, ph, gw, pw)
    x = x.transpose(0, 2, 4, 1, 3, 5).reshape(batch * gh * gw, k_dim)
    x = x.astype(jnp.bfloat16)
    rows = batch * gh * gw

    # Row tile: as large as requested, clamped to the problem size (multiple
    # of 8 sublanes).  No explicit row pad — the ragged last block is masked
    # by Pallas on store (each output row depends only on its own input row).
    tm = max(8, min(tile_rows, rows))
    tm = _round_up(tm, 8)

    # v7x megacore: guarantee >= 2 grid steps when rows permit so both
    # TensorCores get work under dimension_semantics=("parallel",).
    if rows >= 16 and pl.cdiv(rows, tm) < 2:
        tm = max(8, ((rows // 2) // 8) * 8)

    # Scoped-VMEM ceiling from the chip; stay well under the v7x 64 MiB.
    try:
        vmem_cap = int(pltpu.get_tpu_info().vmem_capacity_bytes)
    except Exception:
        vmem_cap = 128 * 1024 * 1024
    vmem_ceiling = min(48 * 1024 * 1024, (vmem_cap * 3) // 4)

    out_itemsize = jnp.dtype(out_dtype).itemsize
    k_pad = _round_up(k_dim, 128)          # x tile lane-pads K up to 128
    hid_pad = _round_up(hidden, 128)

    # Shrink the row tile until the double-buffered footprint fits with
    # headroom under the scoped-VMEM ceiling.
    while True:
        vmem_needed = (
            2 * tm * k_pad * 2                       # x tile, bf16, 2 buffers
            + 2 * tm * hid_pad * out_itemsize        # out tile, 2 buffers
            + 2 * _round_up(k_dim, 16) * hid_pad * 2 # bf16 weight, 2 buffers
            + 2 * 8 * hid_pad * 4)                   # f32 bias, 2 buffers
        if vmem_needed <= vmem_ceiling - (4 << 20) or tm <= 8:
            break
        tm = max(8, _round_up(tm // 2, 8))

    grid = (pl.cdiv(rows, tm),)
    vmem_limit = int(min(max(2 * vmem_needed, 32 * 1024 * 1024), vmem_ceiling))

    cost = pl.CostEstimate(
        flops=2 * rows * k_dim * hidden,
        transcendentals=0,
        bytes_accessed=rows * k_dim * 2          # bf16 x
        + rows * hidden * out_itemsize           # output
        + k_dim * hidden * 2 + hidden * 4,       # weight + bias
    )

    out = pl.pallas_call(
        _patch_projection_kernel,
        out_shape=jax.ShapeDtypeStruct((rows, hidden), out_dtype),
        grid_spec=pltpu.PrefetchScalarGridSpec(
            num_scalar_prefetch=0,
            grid=grid,
            in_specs=[
                pl.BlockSpec((tm, k_dim), lambda i: (i, 0)),
                pl.BlockSpec((k_dim, hidden), lambda i: (0, 0)),
                pl.BlockSpec((1, hidden), lambda i: (0, 0)),
            ],
            out_specs=pl.BlockSpec((tm, hidden), lambda i: (i, 0)),
        ),
        compiler_params=pltpu.CompilerParams(
            dimension_semantics=("parallel",),
            vmem_limit_bytes=vmem_limit,
        ),
        cost_estimate=cost,
    )(x, w_flat, bias)

    embeddings = out.reshape(batch, gh * gw, hidden)
    return embeddings, (gh, gw)


if __name__ == "__main__":
    key = jax.random.PRNGKey(0)
    k1, k2, k3 = jax.random.split(key, 3)

    # Small shapes consistent with the module: pixel_values (B, C, H, W),
    # patch 4x4, embed_dim (hidden) 128 -> lane-dense output.  H/W are NOT
    # multiples of the patch size so the maybe_pad path is exercised.
    B, C, H, W = 2, 3, 62, 66
    patch = (4, 4)
    hidden = 128

    pixel_values = jax.random.normal(k1, (B, C, H, W), dtype=jnp.float32)
    conv_w = (jax.random.normal(k2, (hidden, C, patch[0], patch[1]),
                                jnp.float32)
              * (1.0 / jnp.sqrt(float(C * patch[0] * patch[1]))))
    conv_b = jax.random.normal(k3, (hidden,), jnp.float32) * 0.1

    # One-time parameter prep (flatten + transpose + bf16 cast).
    w_flat, bias = prepare_projection_params(conv_w, conv_b)

    emb, out_dims = patch_embeddings_forward(
        pixel_values, patch, w_flat, bias)
    emb = jax.block_until_ready(emb)

    # Reference: pad (like maybe_pad) + XLA conv (== nn.Conv2d, stride =
    # kernel) + flatten + transpose, all in f32.
    pad_h = (-H) % patch[0]
    pad_w = (-W) % patch[1]
    pv_pad = jnp.pad(pixel_values, ((0, 0), (0, 0), (0, pad_h), (0, pad_w)))
    ref = jax.lax.conv_general_dilated(
        pv_pad, conv_w, window_strides=patch, padding="VALID",
        dimension_numbers=("NCHW", "OIHW", "NCHW"))
    gh, gw = (H + pad_h) // patch[0], (W + pad_w) // patch[1]
    ref = ref.reshape(B, hidden, gh * gw).transpose(0, 2, 1) + conv_b[None, None, :]

    assert emb.shape == (B, gh * gw, hidden), emb.shape
    assert out_dims == (gh, gw), out_dims
    emb_f32 = emb.astype(jnp.float32)
    max_err = float(jnp.max(jnp.abs(emb_f32 - ref)))
    # bf16 activations/weights/output with f32 accumulation at K=48:
    # expected abs error ~1e-2.
    assert jnp.allclose(emb_f32, ref, atol=5e-2, rtol=5e-2), max_err

    print("KERNEL_OK")
</pallas_src>

<mosaic_0001>
module attributes {stable_mosaic.version = 11 : i64} {
  func.func @_patch_projection_kernel(%arg0: i32, %arg1: memref<272x48xbf16, #tpu.memory_space<vmem>>, %arg2: memref<48x128xbf16, #tpu.memory_space<vmem>>, %arg3: memref<1x128xf32, #tpu.memory_space<vmem>>, %arg4: memref<272x128xbf16, #tpu.memory_space<vmem>>) attributes {dimension_semantics = [#tpu.dimension_semantics<parallel>], iteration_bounds = array<i64: 2>, scalar_prefetch = 0 : i64, scratch_operands = 0 : i64, tpu.core_type = #tpu.core_type<tc>, window_params = [{transform_indices = @transform_0, window_bounds = array<i64: 272, 48>}, {pipeline_mode = #tpu.pipeline_mode<synchronous>, transform_indices = @transform_1, window_bounds = array<i64: 48, 128>}, {pipeline_mode = #tpu.pipeline_mode<synchronous>, transform_indices = @transform_2, window_bounds = array<i64: 1, 128>}, {transform_indices = @transform_3, window_bounds = array<i64: 272, 128>}]} {
    %c0 = arith.constant 0 : index
    %c0_0 = arith.constant 0 : index
    %0 = vector.load %arg1[%c0, %c0_0] : memref<272x48xbf16, #tpu.memory_space<vmem>>, vector<272x48xbf16>
    %c0_1 = arith.constant 0 : index
    %c0_2 = arith.constant 0 : index
    %1 = vector.load %arg2[%c0_1, %c0_2] : memref<48x128xbf16, #tpu.memory_space<vmem>>, vector<48x128xbf16>
    %cst = arith.constant dense<0.000000e+00> : vector<272x128xf32>
    %2 = tpu.matmul %0, %1, %cst {dimension_numbers = #tpu.dot_dimension_numbers<[1], [0], [0], [1], [0, 0, 1, 1], [], []>} : vector<272x48xbf16>, vector<48x128xbf16>, vector<272x128xf32> -> vector<272x128xf32>
    %c0_3 = arith.constant 0 : index
    %c0_4 = arith.constant 0 : index
    %3 = vector.load %arg3[%c0_3, %c0_4] : memref<1x128xf32, #tpu.memory_space<vmem>>, vector<1x128xf32>
    %4 = vector.broadcast %3 : vector<1x128xf32> to vector<272x128xf32>
    %5 = arith.addf %2, %4 : vector<272x128xf32>
    %6 = arith.truncf %5 : vector<272x128xf32> to vector<272x128xbf16>
    %c0_5 = arith.constant 0 : index
    %c0_6 = arith.constant 0 : index
    %7 = vector.load %arg4[%c0_5, %c0_6] : memref<272x128xbf16, #tpu.memory_space<vmem>>, vector<272x128xbf16>
    tpu.vector_store %arg4[%c0_5, %c0_6], %6 {strides = array<i32>} : memref<272x128xbf16, #tpu.memory_space<vmem>>, vector<272x128xbf16>,
    return
  }
  func.func @transform_0(%arg0: i32) -> (i32, i32) {
    %c0_i32 = arith.constant 0 : i32
    %c0_i32_0 = arith.constant 0 : i32
    return %arg0, %c0_i32 : i32, i32
  }
  func.func @transform_1(%arg0: i32) -> (i32, i32) {
    %c0_i32 = arith.constant 0 : i32
    %c0_i32_0 = arith.constant 0 : i32
    %c0_i32_1 = arith.constant 0 : i32
    return %c0_i32, %c0_i32_0 : i32, i32
  }
  func.func @transform_2(%arg0: i32) -> (i32, i32) {
    %c0_i32 = arith.constant 0 : i32
    %c0_i32_0 = arith.constant 0 : i32
    %c0_i32_1 = arith.constant 0 : i32
    return %c0_i32, %c0_i32_0 : i32, i32
  }
  func.func @transform_3(%arg0: i32) -> (i32, i32) {
    %c0_i32 = arith.constant 0 : i32
    %c0_i32_0 = arith.constant 0 : i32
    return %arg0, %c0_i32 : i32, i32
  }
}

</mosaic_0001>

<bundles_post_ra>
// kernel: tpu_custom_call.1
= control target key start
LH: loop header
LB: loop body
LE: loop exit
PB: predicated region body
PF: predicated region fallthrough
CT: control target
= control target key end

     0   :  { %8 = vsyncpa [#allocation3], 0  ;;  %s1169_s0 = inlined_call_operand.vmem [shape: bf16[544,48], index: 0, kind: input, shape index: {}]   ;;  %s1170_s1 = inlined_call_operand.vmem [shape: bf16[48,128], index: 1, kind: input, shape index: {}]   ;;  %s1171_s2 = inlined_call_operand.vmem [shape: f32[1,128], index: 2, kind: input, shape index: {}]   ;;  %s1172_s3 = inlined_call_operand.hbm [shape: bf16[544,128], index: 3, kind: output, shape index: {}]  }
   0x1   :  { %10 = vsyncpa [#allocation3 + $0x1], 0  ;;  %s977_s12 = smov 0   ;;  %s979_s13 = smov 0  }
   0x2   :  { %s981_s14 = smov 0   ;;  %s983_s15 = smov 0  }
   0x3 LB: > { %s998_s16 = sadd.s32 4294967295, %s953_s15   ;;  %s612_s17 = sadd.s32 4294967294, %s953_s15   ;;  %s953_s15 = sphi %s983_s15, %s1178_s15   ;;  %s949_s14 = sphi %s981_s14, %s1177_s14   ;;  %s945_s13 = sphi %s979_s13, %s1176_s13   ;;  %s941_s12 = sphi %s977_s12, %s1175_s12  }
   0x4   : > { %s1002_s18 = sadd.s32 1, %s953_s15   ;;  %s91_s19 = sadd.s32 1, %s949_s14 }
   0x5   : > { %s88_s20 = ssub.s32 %s953_s15, %s1002_s18  ;;  %p101_p0 = scmp.ne.s32.totalorder %s949_s14, %s945_s13 }
   0x6   : > { %p89_p1 = scmp.eq.s32.totalorder %s88_s20, 0  ;;  %p102_p2 = scmp.eq.s32.totalorder %s998_s16, 1 }
   0x7   : > { %p107_p3 = scmp.ne.s32.totalorder %s945_s13, %s941_s12  ;;  %p108_p4 = scmp.eq.s32.totalorder %s612_s17, 1 }
   0x8   : > { %s1013_s21 = scalar_select %p89_p1, %s949_s14, %s91_s19  }
   0x9   : > { %p1015_p5 = por %p102_p2, %p101_p0  ;;  %p1019_p6 = por %p108_p4, %p107_p3 }
   0xa   : > { %p615_p7 = scmp.ge.s32.totalorder %s953_s15, 1  ;;  %p141_p8 = scmp.lt.s32.totalorder %s953_s15, 3 }
   0xc   : > { %p142_p9 = pnand %p615_p7, %p141_p8 }
   0xd   : > { %s165_s26 = smul.u32 (!%p142_p9), 34, %s998_s16  ;;  %s162_s8 = sand.u32 (!%p142_p9), 1, %s945_s13  }
   0xe   : > { %145 = sbr.rel (%p142_p9) target bundleno = 243 (0xf3), region = 32  ;;  %s911_s5 = scalar_lea.hbm (!%p142_p9), %s1172_s3, 272 }
   0xf   : > { %p166_p10 = scmp.lt.s32.totalorder (!%p142_p9), %s165_s26, 67  ;;  %s848_s11 = smul.u32 (!%p142_p9), 136, %s162_s8 }
  0x10   : > { %s737_s19 = smul.u32 (!%p142_p9), 136, %s998_s16  ;;  %s535_s16 = scalar_lea.sflag (!%p142_p9), [#allocation3], %s162_s8 }
  0x11   : > { %s1086_s17 = scalar_lea.vmem (!%p142_p9), [#allocation2], %s848_s11 }
  0x12   : > { %s546_s25 = scalar_lea.hbm (!%p142_p9), %s1172_s3, %s737_s19 }
  0x13   : > { %v736_v0 = vld [vmem:[%s1170_s1 + $0x10] sm:$0xff]  ;;  %v735_v1 = vld [vmem:[%s1170_s1 + $0x8] sm:$0xff]  ;;  %s1180_s26 = smov (!%p166_p10, %s165_s26), 67  ;;  %v734_v2 = vld [vmem:[%s1170_s1] sm:$0xff]  ;;  %vm320_vm0 = vcmask 392192   ;;  %s549_s27 = sshll.u32 %s546_s25, 4  ;;  %s550_s27 = int_to_ptr.hbm [resolvable:$true] %s549_s27 }
  0x14   : > { %839 = vmatpush.bf16.msra.mxu1 %v736_v0  ;;  %840 = vmatpush.bf16.msra.mxu2 %v736_v0  ;;  %s616_s4 = sshll.u32 %s1180_s26, 2  ;;  %v1078_v22 = vld [vmem:[%s1171_s2] ss:$0 sm:$0xff]  ;;  %s547_s26 = sshll.u32 %s1086_s17, 4  ;;  %s548_s26 = int_to_ptr.vmem [resolvable:$true] %s547_s26 }
  0x15   : > { %377 = vmatpush.bf16.msra.mxu0 %v736_v0  ;;  %841 = vmatpush.bf16.msra.mxu3 %v736_v0  ;;  %s1038_s7 = scalar_lea.vmem %s1169_s0, %s616_s4  ;;  %s905_s28 = sshra.s32 %s550_s27, 4  ;;  %s906_s28 = int_to_ptr.hbm [resolvable:$true] %s905_s28 }
  0x16   : > { %v721_v3 = vld [vmem:[%s1038_s7 + $0x20] sm:$0xff]  ;;  %v726_v4 = vld [vmem:[%s1038_s7 + $0x48] sm:$0xff]  ;;  %v731_v6 = vld [vmem:[%s1038_s7 + $0x70] sm:$0xff]  ;;  %s907_s29 = scalar_lea.hbm %s906_s28, 136  ;;  %p912_p0 = scmp.lt.s32.totalorder %s906_s28, %s1172_s3 }
  0x17   : > { %v717_v5 = vld [vmem:[%s1038_s7] sm:$0xff]  ;;  %v722_v7 = vld [vmem:[%s1038_s7 + $0x28] sm:$0xff]  ;;  %v727_v8 = vld [vmem:[%s1038_s7 + $0x50] sm:$0xff]  ;;  %p908_p11 = scmp.ne.s32.totalorder %s906_s28, %s907_s29  ;;  %p913_p1 = scmp.lt.s32.totalorder %s911_s5, %s907_s29 }
  0x18   : > { %842 = vmatpush.bf16.msra.mxu1 %v735_v1  ;;  %843 = vmatpush.bf16.msra.mxu2 %v735_v1  ;;  %v718_v9 = vld [vmem:[%s1038_s7 + $0x8] sm:$0xff]  ;;  %v732_v10 = vld [vmem:[%s1038_s7 + $0x78] sm:$0xff]  ;;  %v723_v11 = vld [vmem:[%s1038_s7 + $0x30] sm:$0xff] }
  0x19   : > { %378 = vmatpush.bf16.msra.mxu0 %v735_v1  ;;  %844 = vmatpush.bf16.msra.mxu3 %v735_v1  ;;  %v728_v12 = vld [vmem:[%s1038_s7 + $0x58] sm:$0xff]  ;;  %v719_v13 = vld [vmem:[%s1038_s7 + $0x10] sm:$0xff]  ;;  %v733_v14 = vld [vmem:[%s1038_s7 + $0x80] sm:$0xff]  ;;  %p909_p12 = pnand %p908_p11, %p1015_p5  ;;  %p914_p2 = por %p913_p1, %p912_p0 }
  0x1a   : > { %v724_v15 = vld [vmem:[%s1038_s7 + $0x38] sm:$0xff]  ;;  %v729_v16 = vld [vmem:[%s1038_s7 + $0x60] sm:$0xff]  ;;  %v730_v19 = vld [vmem:[%s1038_s7 + $0x68] sm:$0xff] }
  0x1b   : > { %v720_v17 = vld [vmem:[%s1038_s7 + $0x18] sm:$0xff]  ;;  %v725_v18 = vld [vmem:[%s1038_s7 + $0x40] sm:$0xff]  ;;  %p910_p13 = pneg %p909_p12 }
  0x1c   : > { %845 = vmatpush.bf16.msra.mxu1 %v734_v2  ;;  %846 = vmatpush.bf16.msra.mxu2 %v734_v2 }
  0x1d   : > { %379 = vmatpush.bf16.msra.mxu0 %v734_v2  ;;  %847 = vmatpush.bf16.msra.mxu3 %v734_v2  ;;  %p915_p3 = pnand %p914_p2, %p910_p13 }
  0x1f   : > { %701 = vmatmul.msk.bf16.vlgmr.msra.gmra.mxu1 %vm320_vm0, %v721_v3  ;;  %706 = vmatmul.msk.bf16.vlgmr.msra.gmra.mxu2 %vm320_vm0, %v726_v4 }
  0x20   : > { %697 = vmatmul.msk.bf16.vlgmr.msra.gmra.mxu0 %vm320_vm0, %v717_v5  ;;  %711 = vmatmul.msk.bf16.vlgmr.msra.gmra.mxu3 %vm320_vm0, %v731_v6 }
  0x2f   : > { %702 = vmatmul.msk.bf16.gmra.mxu1 %vm320_vm0, %v722_v7  ;;  %707 = vmatmul.msk.bf16.gmra.mxu2 %vm320_vm0, %v727_v8 }
  0x30   : > { %698 = vmatmul.msk.bf16.gmra.mxu0 %vm320_vm0, %v718_v9  ;;  %712 = vmatmul.msk.bf16.gmra.mxu3 %vm320_vm0, %v732_v10 }
  0x3f   : > { %703 = vmatmul.msk.bf16.gmra.mxu1 %vm320_vm0, %v723_v11  ;;  %708 = vmatmul.msk.bf16.gmra.mxu2 %vm320_vm0, %v728_v12 }
  0x40   : > { %699 = vmatmul.msk.bf16.gmra.mxu0 %vm320_vm0, %v719_v13  ;;  %713 = vmatmul.msk.bf16.gmra.mxu3 %vm320_vm0, %v733_v14 }
  0x4f   : > { %704 = vmatmul.msk.bf16.gmra.mxu1 %vm320_vm0, %v724_v15  ;;  %709 = vmatmul.msk.bf16.gmra.mxu2 %vm320_vm0, %v729_v16 }
  0x50   : > { %700 = vmatmul.msk.bf16.gmra.mxu0 %vm320_vm0, %v720_v17 }
  0x5f   : > { %705 = vmatmul.msk.bf16.gmra.mxu1 %vm320_vm0, %v725_v18  ;;  %710 = vmatmul.msk.bf16.gmra.mxu2 %vm320_vm0, %v730_v19 }
  0x9c   : > { %v401_v20 = vpop.f32.mrf.mxu1 }
  0x9d   : > { %v381_v21 = vpop.f32.mrf.mxu0  ;;  %v402_v27 = vadd.f32 %v1078_v22, %v401_v20 }
  0x9e   : > { %v382_v26 = vadd.f32 %v1078_v22, %v381_v21 }
  0xa2   : > { %v426_v23 = vpop.f32.mrf.mxu2 }
  0xa3   : > { %v451_v24 = vpop.f32.mrf.mxu3  ;;  %v427_v35 = vadd.f32 %v1078_v22, %v426_v23 }
  0xa4   : > { %v403_v25 = vpop.f32.mrf.mxu1  ;;  %v452_v34 = vadd.f32 %v1078_v22, %v451_v24 }
  0xa5   : > { %v404_v28 = vadd.f32 %v1078_v22, %v403_v25  ;;  %v383_v29 = vpop.f32.mrf.mxu0 }
  0xa6   : > { %v384_v30 = vadd.f32 %v1078_v22, %v383_v29 }
  0xa7   : > { %v761_v31 = vpack.c.bf16 %v404_v28, %v402_v27 }
  0xa8   : > { %v741_v32 = vpack.c.bf16 %v384_v30, %v382_v26 }
  0xa9   : > { %826 = vst [vmem:[%s1086_s17 + $0x20] sm:$0xff] %v761_v31  }
  0xaa   : > { %v428_v33 = vpop.f32.mrf.mxu2  ;;  %742 = vst [vmem:[%s1086_s17] sm:$0xff] %v741_v32  }
  0xab   : > { %v429_v36 = vadd.f32 %v1078_v22, %v428_v33  ;;  %v453_v37 = vpop.f32.mrf.mxu3 }
  0xac   : > { %v406_v38 = vpop.f32.mrf.mxu1  ;;  %v454_v39 = vadd.f32 %v1078_v22, %v453_v37 }
  0xad   : > { %v786_v40 = vpack.c.bf16 %v429_v36, %v427_v35  ;;  %v386_v41 = vpop.f32.mrf.mxu0  ;;  %v407_v47 = vadd.f32 %v1078_v22, %v406_v38 }
  0xae   : > { %v811_v42 = vpack.c.bf16 %v454_v39, %v452_v34  ;;  %v387_v46 = vadd.f32 %v1078_v22, %v386_v41 }
  0xaf   : > { %831 = vst [vmem:[%s1086_s17 + $0x48] sm:$0xff] %v786_v40  }
  0xb0   : > { %836 = vst [vmem:[%s1086_s17 + $0x70] sm:$0xff] %v811_v42  }
  0xb2   : > { %v431_v43 = vpop.f32.mrf.mxu2 }
  0xb3   : > { %v456_v44 = vpop.f32.mrf.mxu3  ;;  %v432_v55 = vadd.f32 %v1078_v22, %v431_v43 }
  0xb4   : > { %v408_v45 = vpop.f32.mrf.mxu1  ;;  %v457_v54 = vadd.f32 %v1078_v22, %v456_v44 }
  0xb5   : > { %v409_v48 = vadd.f32 %v1078_v22, %v408_v45  ;;  %v388_v49 = vpop.f32.mrf.mxu0 }
  0xb6   : > { %v389_v50 = vadd.f32 %v1078_v22, %v388_v49 }
  0xb7   : > { %v766_v51 = vpack.c.bf16 %v409_v48, %v407_v47 }
  0xb8   : > { %v746_v52 = vpack.c.bf16 %v389_v50, %v387_v46 }
  0xb9   : > { %827 = vst [vmem:[%s1086_s17 + $0x28] sm:$0xff] %v766_v51  }
  0xba   : > { %v433_v53 = vpop.f32.mrf.mxu2  ;;  %823 = vst [vmem:[%s1086_s17 + $0x8] sm:$0xff] %v746_v52  }
  0xbb   : > { %v434_v56 = vadd.f32 %v1078_v22, %v433_v53  ;;  %v458_v57 = vpop.f32.mrf.mxu3 }
  0xbc   : > { %v411_v58 = vpop.f32.mrf.mxu1  ;;  %v459_v59 = vadd.f32 %v1078_v22, %v458_v57 }
  0xbd   : > { %v791_v60 = vpack.c.bf16 %v434_v56, %v432_v55  ;;  %v391_v61 = vpop.f32.mrf.mxu0  ;;  %v412_v3 = vadd.f32 %v1078_v22, %v411_v58 }
  0xbe   : > { %v816_v62 = vpack.c.bf16 %v459_v59, %v457_v54  ;;  %v392_v2 = vadd.f32 %v1078_v22, %v391_v61 }
  0xbf   : > { %832 = vst [vmem:[%s1086_s17 + $0x50] sm:$0xff] %v791_v60  }
  0xc0   : > { %837 = vst [vmem:[%s1086_s17 + $0x78] sm:$0xff] %v816_v62  }
  0xc2   : > { %v436_v63 = vpop.f32.mrf.mxu2 }
  0xc3   : > { %v461_v0 = vpop.f32.mrf.mxu3  ;;  %v437_v11 = vadd.f32 %v1078_v22, %v436_v63 }
  0xc4   : > { %v413_v1 = vpop.f32.mrf.mxu1  ;;  %v462_v10 = vadd.f32 %v1078_v22, %v461_v0 }
  0xc5   : > { %v414_v4 = vadd.f32 %v1078_v22, %v413_v1  ;;  %v393_v5 = vpop.f32.mrf.mxu0 }
  0xc6   : > { %v394_v6 = vadd.f32 %v1078_v22, %v393_v5 }
  0xc7   : > { %v771_v7 = vpack.c.bf16 %v414_v4, %v412_v3 }
  0xc8   : > { %v751_v8 = vpack.c.bf16 %v394_v6, %v392_v2 }
  0xc9   : > { %828 = vst [vmem:[%s1086_s17 + $0x30] sm:$0xff] %v771_v7  }
  0xca   : > { %v438_v9 = vpop.f32.mrf.mxu2  ;;  %824 = vst [vmem:[%s1086_s17 + $0x10] sm:$0xff] %v751_v8  }
  0xcb   : > { %v439_v12 = vadd.f32 %v1078_v22, %v438_v9  ;;  %v463_v13 = vpop.f32.mrf.mxu3 }
  0xcc   : > { %v416_v14 = vpop.f32.mrf.mxu1  ;;  %v464_v15 = vadd.f32 %v1078_v22, %v463_v13 }
  0xcd   : > { %v796_v16 = vpack.c.bf16 %v439_v12, %v437_v11  ;;  %v396_v17 = vpop.f32.mrf.mxu0  ;;  %v417_v23 = vadd.f32 %v1078_v22, %v416_v14 }
  0xce   : > { %v821_v18 = vpack.c.bf16 %v464_v15, %v462_v10  ;;  %v397_v21 = vadd.f32 %v1078_v22, %v396_v17 }
  0xcf   : > { %833 = vst [vmem:[%s1086_s17 + $0x58] sm:$0xff] %v796_v16  }
  0xd0   : > { %838 = vst [vmem:[%s1086_s17 + $0x80] sm:$0xff] %v821_v18  }
  0xd2   : > { %v441_v19 = vpop.f32.mrf.mxu2 }
  0xd3   : > { %v442_v30 = vadd.f32 %v1078_v22, %v441_v19 }
  0xd4   : > { %v418_v20 = vpop.f32.mrf.mxu1 }
  0xd5   : > { %v419_v24 = vadd.f32 %v1078_v22, %v418_v20  ;;  %v398_v25 = vpop.f32.mrf.mxu0 }
  0xd6   : > { %v399_v26 = vadd.f32 %v1078_v22, %v398_v25 }
  0xd7   : > { %v776_v27 = vpack.c.bf16 %v419_v24, %v417_v23 }
  0xd8   : > { %v756_v28 = vpack.c.bf16 %v399_v26, %v397_v21 }
  0xd9   : > { %829 = vst [vmem:[%s1086_s17 + $0x38] sm:$0xff] %v776_v27  }
  0xda   : > { %v443_v29 = vpop.f32.mrf.mxu2  ;;  %825 = vst [vmem:[%s1086_s17 + $0x18] sm:$0xff] %v756_v28  }
  0xdb   : > { %v444_v31 = vadd.f32 %v1078_v22, %v443_v29 }
  0xdc   : > { %v421_v32 = vpop.f32.mrf.mxu1 }
  0xdd   : > { %v801_v33 = vpack.c.bf16 %v444_v31, %v442_v30  ;;  %v422_v36 = vadd.f32 %v1078_v22, %v421_v32 }
  0xdf   : > { %834 = vst [vmem:[%s1086_s17 + $0x60] sm:$0xff] %v801_v33  }
  0xe2   : > { %v446_v34 = vpop.f32.mrf.mxu2 }
  0xe3   : > { %v447_v40 = vadd.f32 %v1078_v22, %v446_v34 }
  0xe4   : > { %v423_v35 = vpop.f32.mrf.mxu1 }
  0xe5   : > { %v424_v37 = vadd.f32 %v1078_v22, %v423_v35 }
  0xe7   : > { %v781_v38 = vpack.c.bf16 %v424_v37, %v422_v36 }
  0xe9   : > { %830 = vst [vmem:[%s1086_s17 + $0x40] sm:$0xff] %v781_v38  }
  0xea   : > { %v448_v39 = vpop.f32.mrf.mxu2 }
  0xeb   : > { %v449_v41 = vadd.f32 %v1078_v22, %v448_v39 }
  0xed   : > { %v806_v42 = vpack.c.bf16 %v449_v41, %v447_v40 }
  0xef   : > { %835 = vst [vmem:[%s1086_s17 + $0x68] sm:$0xff] %v806_v42  }
  0xf0   : > { %918 = shalt.err (!%p915_p3)
}
  0xf1   : > { %s955_s8 = smov 64   ;;  %s956_s9 = smov 4  }
  0xf2   : > { %849 = dma.vmem_to_hbm [thread:$0]  (%p1015_p5), %s548_s26, 2176, %s550_s27, %s535_s16, %s955_s8, %s955_s8, %s956_s9  }
  0xf3 PF: > { %p855_p4 = scmp.ge.s32.totalorder %s953_s15, 2  ;;  %s564_s10 = sand.u32 1, %s941_s12  }
  0xf4   : > { %s565_s11 = scalar_lea.sflag [#allocation3], %s564_s10 }
  0xf5   : > { %p852_p7 = pnand %p855_p4, %p1019_p6 }
  0xf7   : > { %p853_p8 = pneg %p852_p7 }
  0xf9   : > { %936 = dma.done.wait (%p853_p8), %s565_s11, 2176  }
  0xfa   : > { %938 = vsyncadd (%p853_p8), %s565_s11, 4294965120  ;;  %p13_p9 = scmp.ge.s32.totalorder %s1002_s18, 4   ;;  %s1175_s12 = smov %s945_s13 }
  0xfb   : > { %s1176_s13 = smov %s949_s14  ;;  %s1177_s14 = smov %s1013_s21 }
  0xfc   : > { %s1178_s15 = smov %s1002_s18  ;;  %15 = sbr.rel (!%p13_p9) target bundleno = 3 (0x3), region = 67 }
 0x101   :  { %571 = vsyncpa [#allocation3], 1 }
 0x102   :  { %573 = vsyncpa [#allocation3 + $0x1], 1 }

</bundles_post_ra>
